<compile_context>
chip_gen: v7x
topology: tpu7x:2x2x1
jax: 0.10.0
libtpu: 0.0.40
codegen_flags: <defaults>
</compile_context>

<pallas_src>
import math
from functools import partial

import jax
import jax.numpy as jnp
from jax.experimental import pallas as pl
from jax.experimental.pallas import tpu as pltpu


# --------------------------------------------------------------------------
# Kernel 1: fused in_proj as three per-slab matmuls (q pre-scaled)
# --------------------------------------------------------------------------
def _in_proj_kernel(x_ref, wq_ref, wk_ref, wv_ref, bq_ref, bk_ref, bv_ref,
                    q_ref, k_ref, v_ref):
    # x_ref: (1, TR, D) bf16 ; w*_ref: (D, D) bf16 ; b*_ref: (1, D) f32
    x = x_ref[0]                                            # (TR, D) bf16
    q_ref[0] = (jnp.dot(x, wq_ref[...], preferred_element_type=jnp.float32)
                + bq_ref[0]).astype(q_ref.dtype)
    k_ref[0] = (jnp.dot(x, wk_ref[...], preferred_element_type=jnp.float32)
                + bk_ref[0]).astype(k_ref.dtype)
    v_ref[0] = (jnp.dot(x, wv_ref[...], preferred_element_type=jnp.float32)
                + bv_ref[0]).astype(v_ref.dtype)


# --------------------------------------------------------------------------
# Kernel 2: flash-style multi-head attention + fused out_proj
# --------------------------------------------------------------------------
def _attn_out_kernel(q_ref, k_ref, v_ref, w_out_ref, b_out_ref, o_ref,
                     m_scr, l_scr, acc_scr, *, n_heads, d_head, causal,
                     q_tile, kv_tile, prob_dtype):
    qi = pl.program_id(1)
    ki = pl.program_id(2)
    n_kv = pl.num_programs(2)

    @pl.when(ki == 0)
    def _init():
        m_scr[...] = jnp.full(m_scr.shape, -jnp.inf, m_scr.dtype)
        l_scr[...] = jnp.zeros(l_scr.shape, l_scr.dtype)
        acc_scr[...] = jnp.zeros(acc_scr.shape, acc_scr.dtype)

    def _update(apply_mask):
        if apply_mask:
            # Tile-local mask (shared across heads), finite large negative so
            # rows never become all -inf (first KV tile always has a visible
            # column for every causal row).
            row = (jax.lax.broadcasted_iota(jnp.int32, (q_tile, kv_tile), 0)
                   + qi * q_tile)
            col = (jax.lax.broadcasted_iota(jnp.int32, (q_tile, kv_tile), 1)
                   + ki * kv_tile)
            masked = col > row
            neg = jnp.float32(-1e30)
        for h in range(n_heads):
            lo = h * d_head
            hi = lo + d_head
            q_h = q_ref[0, :, lo:hi]                        # (TQ, dh) bf16 (pre-scaled)
            k_h = k_ref[0, :, lo:hi]                        # (TK, dh) bf16
            s = jnp.einsum('qd,kd->qk', q_h, k_h,
                           preferred_element_type=jnp.float32)   # (TQ, TK) f32
            if apply_mask:
                s = jnp.where(masked, neg, s)
            m_prev = m_scr[h]                               # (TQ, 1) f32
            m_new = jnp.maximum(m_prev, jnp.max(s, axis=-1, keepdims=True))
            alpha = jnp.exp(m_prev - m_new)                 # (TQ, 1)
            p = jnp.exp((s - m_new).astype(prob_dtype))     # (TQ, TK)
            l_scr[h] = alpha * l_scr[h] + jnp.sum(p, axis=-1, keepdims=True,
                                                  dtype=jnp.float32)
            m_scr[h] = m_new
            v_h = v_ref[0, :, lo:hi]                        # (TK, dh) bf16
            pv = jnp.dot(p.astype(v_h.dtype), v_h,
                         preferred_element_type=jnp.float32)     # (TQ, dh) f32
            acc_scr[h] = alpha * acc_scr[h] + pv            # contiguous per-head block

    if causal:
        row0 = qi * q_tile
        col0 = ki * kv_tile
        needed = col0 <= row0 + (q_tile - 1)                # tile not fully masked
        no_mask = (col0 + (kv_tile - 1)) <= row0            # fully below diagonal
        pl.when(needed & no_mask)(partial(_update, False))
        pl.when(needed & jnp.logical_not(no_mask))(partial(_update, True))
    else:
        _update(False)

    @pl.when(ki == n_kv - 1)
    def _finalize():
        # Per-head normalize (EUP approximate reciprocal), concat heads once,
        # then a single lane-dense (TQ, D) @ (D, D) out_proj matmul + bias.
        parts = []
        for h in range(n_heads):
            inv_l = pl.reciprocal(l_scr[h], approx=True)    # (TQ, 1)
            parts.append((acc_scr[h] * inv_l).astype(w_out_ref.dtype))
        attn = jnp.concatenate(parts, axis=-1)              # (TQ, D) bf16
        y = jnp.dot(attn, w_out_ref[...],
                    preferred_element_type=jnp.float32) + b_out_ref[0]
        o_ref[0] = y.astype(o_ref.dtype)


# --------------------------------------------------------------------------
# Wrapper
# --------------------------------------------------------------------------
def _pick_tile(n: int, target: int) -> int:
    """Largest sublane-aligned divisor of n that is <= target (or n itself).

    Note: falls back to n when no 8-aligned divisor exists (prime-ish n); for
    very long such sequences pad S on the caller side instead.
    """
    if n <= target:
        return n
    for t in range(target, 7, -1):
        if n % t == 0 and t % 8 == 0:
            return t
    return n


def _nbytes(shape, dtype) -> int:
    return int(math.prod(shape)) * jnp.dtype(dtype).itemsize


def _vmem_limit(estimate_bytes: int) -> int:
    # Raise above the small scoped defaults (16/32 MiB) but stay well under
    # physical VMEM; estimate already carries headroom for padding.
    return int(min(96 * 1024 * 1024, max(32 * 1024 * 1024, estimate_bytes)))


def self_attention_pallas(x, w_in, b_in, w_out, b_out, *, n_heads: int,
                          causal_mask: bool = False,
                          q_tile: int = 128, kv_tile: int = 256,
                          row_tile: int = 256,
                          compute_dtype=jnp.bfloat16,
                          prob_dtype=jnp.float32):
    """x: (B, S, D). w_in: (3D, D), b_in: (3D,), w_out: (D, D), b_out: (D,).

    prob_dtype=jnp.bfloat16 is recommended on v6e/v7x for d_head<=64 (EUP is
    the binding slot there); keep float32 on v5e.
    """
    B, S, D = x.shape
    assert D % n_heads == 0, "d_embed must be divisible by n_heads"
    d_head = D // n_heads
    scale = 1.0 / math.sqrt(d_head)

    # --- weight prep (glue): per-slab transposes, fold 1/sqrt(d_head) into Q,
    #     cast matmul operands to bf16; biases stay f32 (added post-accum). ---
    w_q = (jnp.transpose(w_in[0 * D:1 * D]).astype(jnp.float32)
           * scale).astype(compute_dtype)                          # (D, D)
    w_k = jnp.transpose(w_in[1 * D:2 * D]).astype(compute_dtype)   # (D, D)
    w_v = jnp.transpose(w_in[2 * D:3 * D]).astype(compute_dtype)   # (D, D)
    b_q = (b_in[0 * D:1 * D].astype(jnp.float32) * scale).reshape(1, D)
    b_k = b_in[1 * D:2 * D].astype(jnp.float32).reshape(1, D)
    b_v = b_in[2 * D:3 * D].astype(jnp.float32).reshape(1, D)
    w_out_t = jnp.transpose(w_out).astype(compute_dtype)           # (D, D)
    b_out_2d = b_out.astype(jnp.float32).reshape(1, D)
    x_c = x.astype(compute_dtype)

    # --- kernel 1: in_proj -> q, k, v as lane-dense (B, S, D) bf16 arrays ---
    tr = _pick_tile(S, row_tile)
    qkv_shape = jax.ShapeDtypeStruct((B, S, D), compute_dtype)
    vmem1 = (2 * 4 * _nbytes((1, tr, D), compute_dtype)            # x + 3 outs, 2-buf
             + 2 * 3 * _nbytes((D, D), compute_dtype)              # weights, 2-buf
             + 2 * 3 * _nbytes((1, D), jnp.float32))               # biases
    q, k, v = pl.pallas_call(
        _in_proj_kernel,
        out_shape=(qkv_shape, qkv_shape, qkv_shape),
        grid_spec=pltpu.PrefetchScalarGridSpec(
            num_scalar_prefetch=0,
            grid=(B, S // tr),
            in_specs=[
                pl.BlockSpec((1, tr, D), lambda b, r: (b, r, 0)),     # x
                pl.BlockSpec((D, D), lambda b, r: (0, 0)),            # w_q
                pl.BlockSpec((D, D), lambda b, r: (0, 0)),            # w_k
                pl.BlockSpec((D, D), lambda b, r: (0, 0)),            # w_v
                pl.BlockSpec((1, D), lambda b, r: (0, 0)),            # b_q
                pl.BlockSpec((1, D), lambda b, r: (0, 0)),            # b_k
                pl.BlockSpec((1, D), lambda b, r: (0, 0)),            # b_v
            ],
            out_specs=[pl.BlockSpec((1, tr, D), lambda b, r: (b, r, 0))] * 3,
        ),
        compiler_params=pltpu.CompilerParams(
            dimension_semantics=("parallel", "parallel"),
            vmem_limit_bytes=_vmem_limit(2 * vmem1)),
    )(x_c, w_q, w_k, w_v, b_q, b_k, b_v)

    # --- kernel 2: flash attention + fused out_proj --------------------------
    tq = _pick_tile(S, q_tile)
    tk = _pick_tile(S, kv_tile)

    if causal_mask:
        # Clamp the K/V block index so fully-masked KV steps reuse the last
        # valid block (no new DMA issued for them).
        def kv_map(b, i, j):
            last_needed = (i * tq + (tq - 1)) // tk
            return (b, jnp.minimum(j, last_needed), 0)
    else:
        def kv_map(b, i, j):
            return (b, j, 0)

    kernel = partial(_attn_out_kernel, n_heads=n_heads, d_head=d_head,
                     causal=causal_mask, q_tile=tq, kv_tile=tk,
                     prob_dtype=prob_dtype)
    vmem2 = (2 * _nbytes((1, tq, D), compute_dtype)                # q, 2-buf
             + 4 * _nbytes((1, tk, D), compute_dtype)              # k, v, 2-buf
             + 2 * _nbytes((1, tq, D), x.dtype)                    # out, 2-buf
             + 2 * _nbytes((D, D), compute_dtype)                  # w_out, 2-buf
             + 2 * _nbytes((1, D), jnp.float32)                    # b_out
             + 2 * _nbytes((n_heads, tq, 128), jnp.float32)        # m, l (lane-padded)
             + _nbytes((n_heads, tq, max(d_head, 128)), jnp.float32))  # acc
    return pl.pallas_call(
        kernel,
        out_shape=jax.ShapeDtypeStruct((B, S, D), x.dtype),
        grid_spec=pltpu.PrefetchScalarGridSpec(
            num_scalar_prefetch=0,
            grid=(B, S // tq, S // tk),
            in_specs=[
                pl.BlockSpec((1, tq, D), lambda b, i, j: (b, i, 0)),  # q
                pl.BlockSpec((1, tk, D), kv_map),                     # k
                pl.BlockSpec((1, tk, D), kv_map),                     # v
                pl.BlockSpec((D, D), lambda b, i, j: (0, 0)),         # w_out_t
                pl.BlockSpec((1, D), lambda b, i, j: (0, 0)),         # b_out
            ],
            out_specs=pl.BlockSpec((1, tq, D), lambda b, i, j: (b, i, 0)),
            scratch_shapes=[
                pltpu.VMEM((n_heads, tq, 1), jnp.float32),       # running max m
                pltpu.VMEM((n_heads, tq, 1), jnp.float32),       # running sum l
                pltpu.VMEM((n_heads, tq, d_head), jnp.float32),  # per-head acc
            ],
        ),
        compiler_params=pltpu.CompilerParams(
            dimension_semantics=("parallel", "parallel", "arbitrary"),
            vmem_limit_bytes=_vmem_limit(2 * vmem2)),
    )(q, k, v, w_out_t, b_out_2d)


# --------------------------------------------------------------------------
# Pure-JAX reference (PyTorch module semantics)
# --------------------------------------------------------------------------
def self_attention_ref(x, w_in, b_in, w_out, b_out, *, n_heads: int,
                       causal_mask: bool = False):
    B, S, D = x.shape
    d_head = D // n_heads
    qkv = jnp.einsum('bsd,ed->bse', x, w_in) + b_in          # (B, S, 3D)
    q, k, v = jnp.split(qkv, 3, axis=-1)

    def heads(t):
        return t.reshape(B, S, n_heads, d_head).transpose(0, 2, 1, 3)

    q, k, v = heads(q), heads(k), heads(v)
    w = jnp.einsum('bhqd,bhkd->bhqk', q, k)
    if causal_mask:
        mask = jnp.triu(jnp.ones((S, S), dtype=bool), k=1)
        w = jnp.where(mask, -jnp.inf, w)
    w = w / math.sqrt(d_head)
    w = jax.nn.softmax(w, axis=-1)
    o = jnp.einsum('bhqk,bhkd->bhqd', w, v)
    o = o.transpose(0, 2, 1, 3).reshape(B, S, D)
    return jnp.einsum('bsd,ed->bse', o, w_out) + b_out


if __name__ == "__main__":
    B, S, D = 2, 8, 32
    n_heads = 4

    key = jax.random.PRNGKey(0)
    kx, k1, k2, k3, k4 = jax.random.split(key, 5)

    bound_in = 1.0 / math.sqrt(D)
    w_in = jax.random.uniform(k1, (3 * D, D), jnp.float32, -bound_in, bound_in)
    b_in = jax.random.uniform(k2, (3 * D,), jnp.float32, -bound_in, bound_in)
    w_out = jax.random.uniform(k3, (D, D), jnp.float32, -bound_in, bound_in)
    b_out = jax.random.uniform(k4, (D,), jnp.float32, -bound_in, bound_in)

    x = jax.random.normal(kx, (B, S, D), jnp.float32)

    # bf16 matmul operands -> compare against the f32 reference with a
    # correspondingly looser tolerance.
    for causal in (False, True):
        out = self_attention_pallas(x, w_in, b_in, w_out, b_out,
                                    n_heads=n_heads, causal_mask=causal)
        out = jax.block_until_ready(out)
        ref = self_attention_ref(x, w_in, b_in, w_out, b_out,
                                 n_heads=n_heads, causal_mask=causal)
        assert out.shape == (B, S, D)
        assert jnp.allclose(out, ref, atol=5e-2, rtol=5e-2), (
            f"mismatch vs reference (causal={causal}), "
            f"max_err={float(jnp.max(jnp.abs(out - ref)))}")

    print("KERNEL_OK")
</pallas_src>

<mosaic_0001>
module attributes {stable_mosaic.version = 11 : i64} {
  func.func @_in_proj_kernel(%arg0: i32, %arg1: i32, %arg2: memref<1x8x32xbf16, #tpu.memory_space<vmem>>, %arg3: memref<32x32xbf16, #tpu.memory_space<vmem>>, %arg4: memref<32x32xbf16, #tpu.memory_space<vmem>>, %arg5: memref<32x32xbf16, #tpu.memory_space<vmem>>, %arg6: memref<1x32xf32, #tpu.memory_space<vmem>>, %arg7: memref<1x32xf32, #tpu.memory_space<vmem>>, %arg8: memref<1x32xf32, #tpu.memory_space<vmem>>, %arg9: memref<1x8x32xbf16, #tpu.memory_space<vmem>>, %arg10: memref<1x8x32xbf16, #tpu.memory_space<vmem>>, %arg11: memref<1x8x32xbf16, #tpu.memory_space<vmem>>) attributes {dimension_semantics = [#tpu.dimension_semantics<parallel>, #tpu.dimension_semantics<parallel>], iteration_bounds = array<i64: 2, 1>, scalar_prefetch = 0 : i64, scratch_operands = 0 : i64, tpu.core_type = #tpu.core_type<tc>, window_params = [{transform_indices = @transform_0, window_bounds = array<i64: 1, 8, 32>}, {pipeline_mode = #tpu.pipeline_mode<synchronous>, transform_indices = @transform_1, window_bounds = array<i64: 32, 32>}, {pipeline_mode = #tpu.pipeline_mode<synchronous>, transform_indices = @transform_2, window_bounds = array<i64: 32, 32>}, {pipeline_mode = #tpu.pipeline_mode<synchronous>, transform_indices = @transform_3, window_bounds = array<i64: 32, 32>}, {pipeline_mode = #tpu.pipeline_mode<synchronous>, transform_indices = @transform_4, window_bounds = array<i64: 1, 32>}, {pipeline_mode = #tpu.pipeline_mode<synchronous>, transform_indices = @transform_5, window_bounds = array<i64: 1, 32>}, {pipeline_mode = #tpu.pipeline_mode<synchronous>, transform_indices = @transform_6, window_bounds = array<i64: 1, 32>}, {transform_indices = @transform_7, window_bounds = array<i64: 1, 8, 32>}, {transform_indices = @transform_8, window_bounds = array<i64: 1, 8, 32>}, {transform_indices = @transform_9, window_bounds = array<i64: 1, 8, 32>}]} {
    %c0 = arith.constant 0 : index
    %c0_0 = arith.constant 0 : index
    %c0_1 = arith.constant 0 : index
    %0 = vector.load %arg2[%c0, %c0_0, %c0_1] : memref<1x8x32xbf16, #tpu.memory_space<vmem>>, vector<1x8x32xbf16>
    %1 = vector.shape_cast %0 : vector<1x8x32xbf16> to vector<8x32xbf16>
    %c0_2 = arith.constant 0 : index
    %c0_3 = arith.constant 0 : index
    %2 = vector.load %arg3[%c0_2, %c0_3] : memref<32x32xbf16, #tpu.memory_space<vmem>>, vector<32x32xbf16>
    %cst = arith.constant dense<0.000000e+00> : vector<8x32xf32>
    %3 = tpu.matmul %1, %2, %cst {dimension_numbers = #tpu.dot_dimension_numbers<[1], [0], [0], [1], [0, 0, 1, 1], [], []>} : vector<8x32xbf16>, vector<32x32xbf16>, vector<8x32xf32> -> vector<8x32xf32>
    %c0_4 = arith.constant 0 : index
    %c0_5 = arith.constant 0 : index
    %4 = vector.load %arg6[%c0_4, %c0_5] : memref<1x32xf32, #tpu.memory_space<vmem>>, vector<1x32xf32>
    %5 = vector.shape_cast %4 : vector<1x32xf32> to vector<32xf32>
    %6 = vector.shape_cast %5 : vector<32xf32> to vector<1x32xf32>
    %7 = vector.broadcast %6 : vector<1x32xf32> to vector<8x32xf32>
    %8 = arith.addf %3, %7 : vector<8x32xf32>
    %9 = arith.truncf %8 : vector<8x32xf32> to vector<8x32xbf16>
    %c0_6 = arith.constant 0 : index
    %c0_7 = arith.constant 0 : index
    %c0_8 = arith.constant 0 : index
    %10 = vector.load %arg9[%c0_6, %c0_7, %c0_8] : memref<1x8x32xbf16, #tpu.memory_space<vmem>>, vector<1x8x32xbf16>
    %11 = vector.shape_cast %10 : vector<1x8x32xbf16> to vector<8x32xbf16>
    %12 = vector.shape_cast %9 : vector<8x32xbf16> to vector<1x8x32xbf16>
    tpu.vector_store %arg9[%c0_6, %c0_7, %c0_8], %12 {strides = array<i32>} : memref<1x8x32xbf16, #tpu.memory_space<vmem>>, vector<1x8x32xbf16>,
    %c0_9 = arith.constant 0 : index
    %c0_10 = arith.constant 0 : index
    %13 = vector.load %arg4[%c0_9, %c0_10] : memref<32x32xbf16, #tpu.memory_space<vmem>>, vector<32x32xbf16>
    %cst_11 = arith.constant dense<0.000000e+00> : vector<8x32xf32>
    %14 = tpu.matmul %1, %13, %cst_11 {dimension_numbers = #tpu.dot_dimension_numbers<[1], [0], [0], [1], [0, 0, 1, 1], [], []>} : vector<8x32xbf16>, vector<32x32xbf16>, vector<8x32xf32> -> vector<8x32xf32>
    %c0_12 = arith.constant 0 : index
    %c0_13 = arith.constant 0 : index
    %15 = vector.load %arg7[%c0_12, %c0_13] : memref<1x32xf32, #tpu.memory_space<vmem>>, vector<1x32xf32>
    %16 = vector.shape_cast %15 : vector<1x32xf32> to vector<32xf32>
    %17 = vector.shape_cast %16 : vector<32xf32> to vector<1x32xf32>
    %18 = vector.broadcast %17 : vector<1x32xf32> to vector<8x32xf32>
    %19 = arith.addf %14, %18 : vector<8x32xf32>
    %20 = arith.truncf %19 : vector<8x32xf32> to vector<8x32xbf16>
    %c0_14 = arith.constant 0 : index
    %c0_15 = arith.constant 0 : index
    %c0_16 = arith.constant 0 : index
    %21 = vector.load %arg10[%c0_14, %c0_15, %c0_16] : memref<1x8x32xbf16, #tpu.memory_space<vmem>>, vector<1x8x32xbf16>
    %22 = vector.shape_cast %21 : vector<1x8x32xbf16> to vector<8x32xbf16>
    %23 = vector.shape_cast %20 : vector<8x32xbf16> to vector<1x8x32xbf16>
    tpu.vector_store %arg10[%c0_14, %c0_15, %c0_16], %23 {strides = array<i32>} : memref<1x8x32xbf16, #tpu.memory_space<vmem>>, vector<1x8x32xbf16>,
    %c0_17 = arith.constant 0 : index
    %c0_18 = arith.constant 0 : index
    %24 = vector.load %arg5[%c0_17, %c0_18] : memref<32x32xbf16, #tpu.memory_space<vmem>>, vector<32x32xbf16>
    %cst_19 = arith.constant dense<0.000000e+00> : vector<8x32xf32>
    %25 = tpu.matmul %1, %24, %cst_19 {dimension_numbers = #tpu.dot_dimension_numbers<[1], [0], [0], [1], [0, 0, 1, 1], [], []>} : vector<8x32xbf16>, vector<32x32xbf16>, vector<8x32xf32> -> vector<8x32xf32>
    %c0_20 = arith.constant 0 : index
    %c0_21 = arith.constant 0 : index
    %26 = vector.load %arg8[%c0_20, %c0_21] : memref<1x32xf32, #tpu.memory_space<vmem>>, vector<1x32xf32>
    %27 = vector.shape_cast %26 : vector<1x32xf32> to vector<32xf32>
    %28 = vector.shape_cast %27 : vector<32xf32> to vector<1x32xf32>
    %29 = vector.broadcast %28 : vector<1x32xf32> to vector<8x32xf32>
    %30 = arith.addf %25, %29 : vector<8x32xf32>
    %31 = arith.truncf %30 : vector<8x32xf32> to vector<8x32xbf16>
    %c0_22 = arith.constant 0 : index
    %c0_23 = arith.constant 0 : index
    %c0_24 = arith.constant 0 : index
    %32 = vector.load %arg11[%c0_22, %c0_23, %c0_24] : memref<1x8x32xbf16, #tpu.memory_space<vmem>>, vector<1x8x32xbf16>
    %33 = vector.shape_cast %32 : vector<1x8x32xbf16> to vector<8x32xbf16>
    %34 = vector.shape_cast %31 : vector<8x32xbf16> to vector<1x8x32xbf16>
    tpu.vector_store %arg11[%c0_22, %c0_23, %c0_24], %34 {strides = array<i32>} : memref<1x8x32xbf16, #tpu.memory_space<vmem>>, vector<1x8x32xbf16>,
    return
  }
  func.func @transform_0(%arg0: i32, %arg1: i32) -> (i32, i32, i32) {
    %c0_i32 = arith.constant 0 : i32
    %c0_i32_0 = arith.constant 0 : i32
    return %arg0, %arg1, %c0_i32 : i32, i32, i32
  }
  func.func @transform_1(%arg0: i32, %arg1: i32) -> (i32, i32) {
    %c0_i32 = arith.constant 0 : i32
    %c0_i32_0 = arith.constant 0 : i32
    %c0_i32_1 = arith.constant 0 : i32
    return %c0_i32, %c0_i32_0 : i32, i32
  }
  func.func @transform_2(%arg0: i32, %arg1: i32) -> (i32, i32) {
    %c0_i32 = arith.constant 0 : i32
    %c0_i32_0 = arith.constant 0 : i32
    %c0_i32_1 = arith.constant 0 : i32
    return %c0_i32, %c0_i32_0 : i32, i32
  }
  func.func @transform_3(%arg0: i32, %arg1: i32) -> (i32, i32) {
    %c0_i32 = arith.constant 0 : i32
    %c0_i32_0 = arith.constant 0 : i32
    %c0_i32_1 = arith.constant 0 : i32
    return %c0_i32, %c0_i32_0 : i32, i32
  }
  func.func @transform_4(%arg0: i32, %arg1: i32) -> (i32, i32) {
    %c0_i32 = arith.constant 0 : i32
    %c0_i32_0 = arith.constant 0 : i32
    %c0_i32_1 = arith.constant 0 : i32
    return %c0_i32, %c0_i32_0 : i32, i32
  }
  func.func @transform_5(%arg0: i32, %arg1: i32) -> (i32, i32) {
    %c0_i32 = arith.constant 0 : i32
    %c0_i32_0 = arith.constant 0 : i32
    %c0_i32_1 = arith.constant 0 : i32
    return %c0_i32, %c0_i32_0 : i32, i32
  }
  func.func @transform_6(%arg0: i32, %arg1: i32) -> (i32, i32) {
    %c0_i32 = arith.constant 0 : i32
    %c0_i32_0 = arith.constant 0 : i32
    %c0_i32_1 = arith.constant 0 : i32
    return %c0_i32, %c0_i32_0 : i32, i32
  }
  func.func @transform_7(%arg0: i32, %arg1: i32) -> (i32, i32, i32) {
    %c0_i32 = arith.constant 0 : i32
    %c0_i32_0 = arith.constant 0 : i32
    return %arg0, %arg1, %c0_i32 : i32, i32, i32
  }
  func.func @transform_8(%arg0: i32, %arg1: i32) -> (i32, i32, i32) {
    %c0_i32 = arith.constant 0 : i32
    %c0_i32_0 = arith.constant 0 : i32
    return %arg0, %arg1, %c0_i32 : i32, i32, i32
  }
  func.func @transform_9(%arg0: i32, %arg1: i32) -> (i32, i32, i32) {
    %c0_i32 = arith.constant 0 : i32
    %c0_i32_0 = arith.constant 0 : i32
    return %arg0, %arg1, %c0_i32 : i32, i32, i32
  }
}

</mosaic_0001>

<bundles_post_ra>
// kernel: tpu_custom_call.1
= control target key start
LH: loop header
LB: loop body
LE: loop exit
PB: predicated region body
PF: predicated region fallthrough
CT: control target
= control target key end

     0   :  { %s1746_s0 = inlined_call_operand.hbm [shape: bf16[2,8,32], index: 0, kind: input, shape index: {}]   ;;  %s1747_s1 = inlined_call_operand.hbm [shape: bf16[32,32], index: 1, kind: input, shape index: {}]   ;;  %s1748_s2 = inlined_call_operand.hbm [shape: bf16[32,32], index: 2, kind: input, shape index: {}]   ;;  %s1749_s3 = inlined_call_operand.hbm [shape: bf16[32,32], index: 3, kind: input, shape index: {}]   ;;  %s1750_s4 = inlined_call_operand.vmem [shape: f32[1,32], index: 4, kind: input, shape index: {}]   ;;  %s1751_s5 = inlined_call_operand.vmem [shape: f32[1,32], index: 5, kind: input, shape index: {}]   ;;  %s1752_s6 = inlined_call_operand.vmem [shape: f32[1,32], index: 6, kind: input, shape index: {}]   ;;  %s1753_s7 = inlined_call_operand.hbm [shape: bf16[2,8,32], index: 7, kind: output, shape index: {0}]   ;;  %s1754_s8 = inlined_call_operand.hbm [shape: bf16[2,8,32], index: 8, kind: output, shape index: {1}]   ;;  %s1755_s9 = inlined_call_operand.hbm [shape: bf16[2,8,32], index: 9, kind: output, shape index: {2}]  }
   0x1   :  { %1765 = sst [smem:[#allocation21_spill]] %s1746_s0 }
   0x2   :  { %1766 = sst [smem:[#allocation22_spill]] %s1747_s1 }
   0x3   :  { %1767 = sst [smem:[#allocation23_spill]] %s1752_s6 }
   0x4   :  { %1768 = sst [smem:[#allocation24_spill]] %s1754_s8 }
   0x5   :  { %1769 = sst [smem:[#allocation25_spill]] %s1755_s9 }
   0x6   :  { %15 = vsyncpa [#allocation3], 0 }
   0x7   :  { %17 = vsyncpa [#allocation3 + $0x1], 0 }
   0x8   :  { %18 = vsyncpa [#allocation6], 0 }
   0x9   :  { %19 = vsyncpa [#allocation9], 0 }
   0xa   :  { %20 = vsyncpa [#allocation4], 0 }
   0xb   :  { %22 = vsyncpa [#allocation4 + $0x1], 0 }
   0xc   :  { %23 = vsyncpa [#allocation12], 0 }
   0xd   :  { %25 = vsyncpa [#allocation12 + $0x1], 0  ;;  %s1368_s30 = smov 0   ;;  %s1370_s10 = smov 0  }
   0xe   :  { %s1372_s11 = smov 0   ;;  %s1374_s12 = smov 0  }
   0xf   :  { %s1376_s13 = smov 0   ;;  %s1378_s14 = smov 0  }
  0x10 LB: > { %1770 = sst [smem:[#allocation19_spill]] %s1285_s30  ;;  %s1399_s15 = sadd.s32 4294967295, %s1305_s14   ;;  %s1305_s14 = sphi %s1378_s14, %s31_s14   ;;  %s1301_s13 = sphi %s1376_s13, %s1802_s13   ;;  %s1297_s12 = sphi %s1374_s12, %s1801_s12   ;;  %s1293_s11 = sphi %s1372_s11, %s1800_s11   ;;  %s1289_s10 = sphi %s1370_s10, %s1799_s10   ;;  %s1285_s30 = sphi %s1368_s30, %s1798_s30  }
  0x11   : > { %s1756_s16 = sadd.s32 4294967294, %s1305_s14   ;;  %p65_p0 = scmp.ne.s32.totalorder %s1289_s10, %s1285_s30 }
  0x12   : > { %p1758_p1 = scmp.eq.s32.totalorder %s1399_s15, 0  ;;  %p223_p3 = scmp.eq.s32.totalorder %s1756_s16, 1 }
  0x13   : > { %p860_p5 = scmp.ge.s32.totalorder %s1305_s14, 1  ;;  %p286_p7 = scmp.lt.s32.totalorder %s1305_s14, 3 }
  0x14   : > { %p1410_p4 = por %p1758_p1, %p65_p0  ;;  %p1415_p6 = por %p223_p3, %p65_p0 }
  0x15   : > { %p1420_p8 = pnand %p860_p5, %p286_p7  ;;  %s1307_s20 = smov [#allocation5]  }
  0x16   : > { %s1771_s17 = scalar_select %p1410_p4, 1, 0 }
  0x17   : > { %s1772_s18 = scalar_select %p1415_p6, 1, 0 }
  0x18   : > { %s1774_s19 = scalar_select %p1420_p8, 1, 0 }
  0x19   : > { %1773 = sst [smem:[#allocation20_spill]] %s1772_s18  ;;  %s298_s21 = sshll.u32 %s1307_s20, 4  ;;  %s1424_s21 = int_to_ptr.vmem [resolvable:$true] %s298_s21 }
  0x1a   : > { %p948_p9 = pneg %p1420_p8  ;;  %s1308_s23 = smov [#allocation7]  }
  0x1b   : > { %s311_s24 = sshll.u32 %s1308_s23, 4  ;;  %s1309_s25 = smov [#allocation8]   ;;  %s1435_s24 = int_to_ptr.vmem [resolvable:$true] %s311_s24 }
  0x1c   : > { %p1431_p11 = pnand %p948_p9, %p1758_p1  ;;  %s1437_s26 = sshll.u32 %s1309_s25, 4  ;;  %s325_s26 = int_to_ptr.vmem [resolvable:$true] %s1437_s26 }
  0x1d   : > { %s1776_s1 = sld [smem:[#allocation22_spill]] }
  0x1e   : > { %p1447_p13 = pneg %p1431_p11 }
  0x23   : > { %s1041_s29 = scalar_lea.hbm %s1776_s1, 256 }
  0x24   : > { %p1042_p12 = scmp.ne.s32.totalorder %s1776_s1, %s1041_s29  ;;  %p1048_p5 = scmp.lt.u32.totalorder %s1041_s29, %s1776_s1 }
  0x26   : > { %p1044_p0 = pnand %p1447_p13, %p1042_p12 }
  0x28   : > { %p1045_p3 = pneg %p1044_p0 }
  0x2a   : > { %p1050_p7 = pnand %p1048_p5, %p1045_p3 }
  0x2c   : > { %1053 = shalt.err (!%p1050_p7)
}
  0x2d   : > { %s1054_s16 = scalar_lea.vmem %s1424_s21, 256  ;;  %p1062_p2 = scmp.lt.s32.totalorder %s1424_s21, %s1424_s21 }
  0x2e   : > { %p1055_p9 = scmp.ne.s32.totalorder %s1424_s21, %s1054_s16  ;;  %p1063_p6 = scmp.lt.s32.totalorder %s1054_s16, %s1054_s16 }
  0x30   : > { %p1057_p10 = pnand %p1055_p9, %p1447_p13  ;;  %p1064_p12 = por %p1063_p6, %p1062_p2 }
  0x32   : > { %p1058_p1 = pneg %p1057_p10 }
  0x34   : > { %p1065_p0 = pnand %p1064_p12, %p1058_p1 }
  0x36   : > { %1068 = shalt.err (!%p1065_p0)
}
  0x37   : > { %s1310_s27 = smov 64   ;;  %s1311_s28 = smov 4  }
  0x38   : > { %951 = dma.hbm_to_vmem [thread:$0]  (!%p1431_p11), %s1776_s1, 256, %s1424_s21, [#allocation6], %s1310_s27, %s1310_s27, %s1311_s28  }
  0x39   : > { %s1069_s16 = scalar_lea.hbm %s1748_s2, 256 }
  0x3a   : > { %p1070_p1 = scmp.ne.s32.totalorder %s1748_s2, %s1069_s16  ;;  %p1076_p10 = scmp.lt.u32.totalorder %s1069_s16, %s1748_s2 }
  0x3c   : > { %p1072_p2 = pnand %p1070_p1, %p1447_p13 }
  0x3e   : > { %p1073_p6 = pneg %p1072_p2 }
  0x40   : > { %p1078_p3 = pnand %p1076_p10, %p1073_p6 }
  0x42   : > { %1081 = shalt.err (!%p1078_p3)
}
  0x43   : > { %s1082_s21 = scalar_lea.vmem %s1435_s24, 256  ;;  %p1090_p12 = scmp.lt.s32.totalorder %s1435_s24, %s1435_s24 }
  0x44   : > { %p1083_p5 = scmp.ne.s32.totalorder %s1435_s24, %s1082_s21  ;;  %p1091_p0 = scmp.lt.s32.totalorder %s1082_s21, %s1082_s21 }
  0x46   : > { %p1085_p7 = pnand %p1083_p5, %p1447_p13  ;;  %p1092_p1 = por %p1091_p0, %p1090_p12 }
  0x48   : > { %p1086_p9 = pneg %p1085_p7 }
  0x4a   : > { %p1093_p2 = pnand %p1092_p1, %p1086_p9 }
  0x4c   : > { %1096 = shalt.err (!%p1093_p2)
}
  0x4d   : > { %954 = dma.hbm_to_vmem [thread:$0]  (!%p1431_p11), %s1748_s2, 256, %s1435_s24, [#allocation6], %s1310_s27, %s1310_s27, %s1311_s28  }
  0x4e   : > { %s1097_s29 = scalar_lea.hbm %s1749_s3, 256 }
  0x4f   : > { %p1098_p6 = scmp.ne.s32.totalorder %s1749_s3, %s1097_s29  ;;  %p1104_p5 = scmp.lt.u32.totalorder %s1097_s29, %s1749_s3 }
  0x51   : > { %p1100_p10 = pnand %p1098_p6, %p1447_p13 }
  0x53   : > { %p1101_p3 = pneg %p1100_p10 }
  0x55   : > { %p1106_p7 = pnand %p1104_p5, %p1101_p3 }
  0x57   : > { %1109 = shalt.err (!%p1106_p7)
}
  0x58   : > { %s1110_s21 = scalar_lea.vmem %s325_s26, 256  ;;  %p1118_p1 = scmp.lt.s32.totalorder %s325_s26, %s325_s26 }
  0x59   : > { %p1111_p9 = scmp.ne.s32.totalorder %s325_s26, %s1110_s21  ;;  %p1119_p2 = scmp.lt.s32.totalorder %s1110_s21, %s1110_s21 }
  0x5b   : > { %p1113_p12 = pnand %p1111_p9, %p1447_p13  ;;  %p1120_p4 = por %p1119_p2, %p1118_p1 }
  0x5d   : > { %p1114_p0 = pneg %p1113_p12 }
  0x5f   : > { %p1121_p8 = pnand %p1120_p4, %p1114_p0 }
  0x61   : > { %1124 = shalt.err (!%p1121_p8)
}
  0x62   : > { %957 = dma.hbm_to_vmem [thread:$0]  (!%p1431_p11), %s1749_s3, 256, %s325_s26, [#allocation9], %s1310_s27, %s1310_s27, %s1311_s28  }
  0x63   : > { %s52_s18 = sadd.s32 1, %s1293_s11  ;;  %s43_s22 = sadd.s32 1, %s1301_s13 }
  0x64   : > { %p59_p4 = scmp.ne.s32.totalorder %s1293_s11, %s1289_s10  ;;  %p45_p8 = scmp.ge.s32.totalorder %s43_s22, 2 }
  0x65   : > { %p60_p13 = scmp.eq.s32.totalorder %s1305_s14, 0  ;;  %p1778_p6 = scmp.eq.s32.totalorder %s1399_s15, 1 }
  0x66   : > { %p975_p3 = scmp.lt.s32.totalorder %s1305_s14, 2  ;;  %s1804_s22 = smov (%p45_p8, %s43_s22), 0 }
  0x67   : > { %p1526_p10 = por %p1778_p6, %p59_p4  ;;  %p61_p5 = por %p60_p13, %p59_p4 }
  0x68   : > { %s347_s9 = sand.u32 1, %s1293_s11   ;;  %s47_s30 = ssub.s32 %s1301_s13, %s1804_s22 }
  0x69   : > { %p50_p7 = scmp.eq.s32.totalorder %s47_s30, 0  ;;  %s865_s26 = sshll.u32 %s347_s9, 2 }
  0x6a   : > { %s866_s27 = sshll.u32 %s1301_s13, 6  ;;  %s1780_s0 = sld [smem:[#allocation21_spill]] }
  0x6b   : > { %s1538_s28 = scalar_select %p50_p7, %s1293_s11, %s52_s18  }
  0x6c   : > { %s351_s25 = scalar_lea.vmem [#allocation2], %s865_s26  ;;  %p1549_p11 = pnand %p975_p3, %p61_p5 }
  0x6d   : > { %s359_s16 = sshll.u32 %s351_s25, 4  ;;  %s348_s24 = scalar_lea.sflag [#allocation3], %s347_s9  ;;  %s1545_s16 = int_to_ptr.vmem [resolvable:$true] %s359_s16 }
  0x6e   : > { %p1127_p12 = pneg %p1549_p11 }
  0x70   : > { %s1543_s23 = scalar_lea.hbm %s1780_s0, %s866_s27  ;;  %s1130_s26 = scalar_lea.hbm %s1780_s0, 128 }
  0x71   : > { %s1125_s6 = scalar_lea.hbm %s1543_s23, 64  ;;  %p1131_p2 = scmp.lt.u32.totalorder %s1543_s23, %s1780_s0 }
  0x72   : > { %p1126_p9 = scmp.ne.s32.totalorder %s1543_s23, %s1125_s6  ;;  %p1132_p4 = scmp.lt.u32.totalorder %s1130_s26, %s1125_s6 }
  0x73   : > { %p1134_p13 = scmp.lt.u32.totalorder %s1125_s6, %s1543_s23 }
  0x74   : > { %p1128_p0 = pnand %p1127_p12, %p1126_p9  ;;  %p1133_p8 = por %p1132_p4, %p1131_p2 }
  0x76   : > { %p1129_p1 = pneg %p1128_p0  ;;  %p1135_p6 = por %p1134_p13, %p1133_p8 }
  0x78   : > { %p1136_p3 = pnand %p1135_p6, %p1129_p1 }
  0x7a   : > { %1139 = shalt.err (!%p1136_p3)
}
  0x7b   : > { %s1140_s9 = scalar_lea.vmem %s1545_s16, 64  ;;  %s1312_s20 = smov [#allocation2]  }
  0x7c   : > { %p1141_p5 = scmp.ne.s32.totalorder %s1545_s16, %s1140_s9  ;;  %s1145_s25 = sshll.u32 %s1312_s20, 4  ;;  %s1146_s25 = int_to_ptr.vmem [resolvable:$false] %s1145_s25 }
  0x7d   : > { %s1147_s18 = scalar_lea.vmem %s1146_s25, 128  ;;  %p1148_p0 = scmp.lt.s32.totalorder %s1545_s16, %s1146_s25 }
  0x7e   : > { %p1143_p7 = pnand %p1141_p5, %p1127_p12  ;;  %p1149_p2 = scmp.lt.s32.totalorder %s1147_s18, %s1140_s9 }
  0x80   : > { %p1144_p9 = pneg %p1143_p7  ;;  %p1150_p4 = por %p1149_p2, %p1148_p0 }
  0x82   : > { %p1151_p8 = pnand %p1150_p4, %p1144_p9 }
  0x84   : > { %1154 = shalt.err (!%p1151_p8)
}
  0x85   : > { %961 = dma.hbm_to_vmem [thread:$0]  (!%p1549_p11), %s1543_s23, 64, %s1545_s16, %s348_s24  }
  0x86   : > { %p1782_p1 = scmp.ne.s32.totalorder %s1774_s19, 0 }
  0x87   : > { %s1581_s6 = sand.u32 (!%p1782_p1), 1, %s1289_s10   ;;  %p1783_p12 = scmp.ne.s32.totalorder (!%p1782_p1), %s1771_s17, 0 }
  0x88   : > { %368 = sbr.rel (%p1782_p1) target bundleno = 438 (0x1b6), region = 48  ;;  %s1584_s30 = sshll.u32 (!%p1782_p1), %s1581_s6, 2 }
  0x89   : > { %s371_s26 = scalar_lea.sflag (!%p1782_p1), [#allocation3], %s1581_s6  ;;  %s374_s27 = scalar_lea.vmem (!%p1782_p1), [#allocation2], %s1584_s30 }
  0x8f   : > { %1264 = dma.done.wait (%p1783_p12), %s371_s26, 64  }
  0x90   : > { %1266 = vsyncadd (%p1783_p12), %s371_s26, 4294967232  ;;  %p1784_p11 = scmp.eq.s32.totalorder %s1399_s15, 0 }
  0x92   : > { %1268 = dma.done.wait (%p1784_p11), [#allocation6], 512   ;;  %p1785_p13 = pmov %p1784_p11 }
  0x93   : > { %p1786_p6 = pmov %p1784_p11 }
  0x94   : > { %1270 = vsyncadd (%p1785_p13), [#allocation6], 4294966784 }
  0x95   : > { %1272 = dma.done.wait (%p1786_p6), [#allocation9], 256   ;;  %p1787_p3 = pmov %p1786_p6 }
  0x96   : > { %v1313_v0 = vmov 0.0   ;;  %vm1314_vm0 = vmmov 0   ;;  %v1035_v1 = vld [vmem:[#allocation5] sm:$0xff]   ;;  %v1036_v2 = vld [vmem:[#allocation5 + $0x8] sm:$0xff]   ;;  %v1037_v3 = vld [vmem:[#allocation7] sm:$0xff]   ;;  %vm456_vm1 = vcmask 261120  }
  0x97   : > { %1274 = vsyncadd (%p1787_p3), [#allocation9], 4294967040  ;;  %904 = vmatprep.subr.bf16.mxu0 %v1313_v0  ;;  %912 = vmatprep.subr.bf16.mxu1 %v1313_v0  ;;  %v1039_v4 = vld [vmem:[#allocation7 + $0x8] sm:$0xff]   ;;  %v1038_v6 = vld [vmem:[#allocation8] sm:$0xff]   ;;  %s1610_s21 = sshll.u32 %s1297_s12, 6  ;;  %s416_s24 = scalar_lea.vmem [#allocation10], %s1584_s30 }
  0x98   : > { %908 = vmatprep.mubr.msk.bf16.mxu0 %vm1314_vm0, %v1313_v0  ;;  %916 = vmatprep.mubr.msk.bf16.mxu1 %vm1314_vm0, %v1313_v0  ;;  %v432_v5 = vld [vmem:[%s374_s27] sm:$0xf]  ;;  %v1040_v7 = vld [vmem:[#allocation8 + $0x8] sm:$0xff]   ;;  %s658_s29 = sshll.u32 %s416_s24, 4  ;;  %vm501_vm2 = vcmask 257024   ;;  %s1764_s20 = scalar_lea.vmem [#allocation11], %s1584_s30  ;;  %s1623_s29 = int_to_ptr.vmem [resolvable:$true] %s658_s29 }
  0x99   : > { %905 = vmatpush3.bf16.msra.mxu0 %v1035_v1  ;;  %913 = vmatpush3.bf16.msra.mxu1 %v1037_v3  ;;  %v875_v8 = vld [vmem:[%s1750_s4] ss:$0 sm:$0xff]  ;;  %s672_s25 = sshll.u32 %s1764_s20, 4  ;;  %s1621_s26 = scalar_lea.hbm %s1753_s7, %s1610_s21  ;;  %s1631_s25 = int_to_ptr.vmem [resolvable:$true] %s672_s25 }
  0x9a   : > { %906 = vmatprep.subr.bf16.mxu0 %v1313_v0  ;;  %914 = vmatprep.subr.bf16.mxu1 %v1313_v0  ;;  %v879_v10 = vld [vmem:[%s1751_s5] ss:$0 sm:$0xff]  ;;  %s1788_s19 = sld [smem:[#allocation24_spill]]  ;;  %s1789_s18 = sld [smem:[#allocation23_spill]] }
  0x9b   : > { %s634_s9 = scalar_lea.sflag [#allocation4], %s1581_s6  ;;  %s1155_s20 = scalar_lea.vmem %s1623_s29, 64 }
  0x9c   : > { %p1156_p5 = scmp.ne.s32.totalorder %s1623_s29, %s1155_s20  ;;  %s1315_s0 = smov [#allocation10]  }
  0x9d   : > { %907 = vmatpush3.bf16.msra.mxu0 %v1036_v2  ;;  %915 = vmatpush3.bf16.msra.mxu1 %v1039_v4  ;;  %s1159_s1 = sshll.u32 %s1315_s0, 4  ;;  %s1160_s1 = int_to_ptr.vmem [resolvable:$false] %s1159_s1 }
  0x9e   : > { %920 = vmatprep.subr.bf16.mxu0 %v1313_v0  ;;  %p1157_p7 = pnand %p1156_p5, %p1526_p10  ;;  %s1161_s27 = scalar_lea.vmem %s1160_s1, 128 }
  0x9f   : > { %p1162_p0 = scmp.lt.s32.totalorder %s1623_s29, %s1160_s1  ;;  %p1163_p2 = scmp.lt.s32.totalorder %s1161_s27, %s1155_s20 }
  0xa0   : > { %909 = vmatmul.mubr.msk.bf16.vlgmr.msra.gmra.mrb[0].mxu0 %vm456_vm1, %v432_v5  ;;  %917 = vmatmul.mubr.msk.bf16.vlgmr.msra.gmra.mrb[0].mxu1 %vm456_vm1, %v432_v5  ;;  %s1629_s23 = scalar_lea.hbm %s1788_s19, %s1610_s21  ;;  %v883_v22 = vld [vmem:[%s1789_s18] ss:$0 sm:$0xff]  ;;  %p1158_p9 = pneg %p1157_p7 }
  0xa1   : > { %921 = vmatpush3.bf16.msra.mxu0 %v1038_v6  ;;  %924 = vmatprep.mubr.msk.bf16.mxu0 %vm1314_vm0, %v1313_v0  ;;  %p1164_p4 = por %p1163_p2, %p1162_p0 }
  0xa2   : > { %922 = vmatprep.subr.bf16.mxu0 %v1313_v0 }
  0xa3   : > { %p1165_p8 = pnand %p1164_p4, %p1158_p9 }
  0xa5   : > { %923 = vmatpush3.bf16.msra.mxu0 %v1040_v7 }
  0xa8   : > { %925 = vmatmul.mubr.msk.bf16.vlgmr.msra.gmra.mrb[4].mxu0 %vm456_vm1, %v432_v5 }
 0x173   : > { %v494_v9 = vpop.f32.mrb[0].mxu0  ;;  %v560_v14 = vpop.f32.mrb[0].mxu1 }
 0x174   : > { %v495_v11 = vadd.f32 %v875_v8, %v494_v9  ;;  %v910_v12 = vpop.f32.mrb[1].mxu0  ;;  %v561_v17 = vadd.f32 %v879_v10, %v560_v14  ;;  %v918_v18 = vpop.f32.mrb[1].mxu1 }
 0x175   : > { %v497_v13 = vpop.f32.mrb[2].mxu0  ;;  %v563_v19 = vpop.f32.mrb[2].mxu1 }
 0x176   : > { %v500_v15 = vpack.c.bf16 %v495_v11, %v495_v11  ;;  %v911_v16 = vpop.f32.mrb[3].mxu0  ;;  %v566_v20 = vpack.c.bf16 %v561_v17, %v561_v17  ;;  %v919_v21 = vpop.f32.mrb[3].mxu1 }
 0x178   : > { %502 = vst.msk [vmem:[%s416_s24] sm:$0xf] %vm501_vm2, %v500_v15 }
 0x179   : > { %1168 = shalt.err (!%p1165_p8)
}
 0x17a   : > { %s1169_s6 = scalar_lea.hbm %s1621_s26, 64  ;;  %s1173_s0 = scalar_lea.hbm %s1753_s7, 128 }
 0x17b   : > { %p1170_p1 = scmp.ne.s32.totalorder %s1621_s26, %s1169_s6  ;;  %p1174_p13 = scmp.lt.u32.totalorder %s1621_s26, %s1753_s7 }
 0x17c   : > { %p1175_p6 = scmp.lt.u32.totalorder %s1173_s0, %s1169_s6  ;;  %p1177_p5 = scmp.lt.u32.totalorder %s1169_s6, %s1621_s26 }
 0x17d   : > { %p1171_p12 = pnand %p1170_p1, %p1526_p10 }
 0x17e   : > { %p1176_p3 = por %p1175_p6, %p1174_p13 }
 0x17f   : > { %p1172_p11 = pneg %p1171_p12 }
 0x180   : > { %p1178_p7 = por %p1177_p5, %p1176_p3 }
 0x182   : > { %p1179_p9 = pnand %p1178_p7, %p1172_p11 }
 0x184   : > { %1182 = shalt.err (!%p1179_p9)
}
 0x185   : > { %942 = dma.vmem_to_hbm [thread:$0]  (%p1526_p10), %s1623_s29, 64, %s1621_s26, %s634_s9   ;;  %v625_v23 = vpop.f32.mrb[4].mxu0 }
 0x186   : > { %s1790_s20 = scalar_lea.vmem [#allocation11], %s1584_s30  ;;  %s430_s12 = scalar_lea.vmem [#allocation13], %s1584_s30 }
 0x187   : > { %567 = vst.msk [vmem:[%s1790_s20] sm:$0xf] %vm501_vm2, %v566_v20  ;;  %s1665_s18 = sshll.u32 %s430_s12, 4  ;;  %s1791_s27 = sand.u32 1, %s1399_s15   ;;  %s687_s18 = int_to_ptr.vmem [resolvable:$true] %s1665_s18 }
 0x188   : > { %s1669_s6 = scalar_lea.sflag [#allocation12], %s1791_s27  ;;  %s1183_s24 = scalar_lea.vmem %s1631_s25, 64 }
 0x189   : > { %p1184_p0 = scmp.ne.s32.totalorder %s1631_s25, %s1183_s24  ;;  %s1316_s17 = smov [#allocation11]  }
 0x18a   : > { %s1187_s0 = sshll.u32 %s1316_s17, 4  ;;  %s1188_s0 = int_to_ptr.vmem [resolvable:$false] %s1187_s0 }
 0x18b   : > { %p1185_p2 = pnand %p1184_p0, %p1526_p10  ;;  %s1189_s29 = scalar_lea.vmem %s1188_s0, 128 }
 0x18c   : > { %p1190_p8 = scmp.lt.s32.totalorder %s1631_s25, %s1188_s0  ;;  %p1191_p1 = scmp.lt.s32.totalorder %s1189_s29, %s1183_s24 }
 0x18d   : > { %p1186_p4 = pneg %p1185_p2 }
 0x18e   : > { %p1192_p12 = por %p1191_p1, %p1190_p8 }
 0x190   : > { %p1193_p11 = pnand %p1192_p12, %p1186_p4 }
 0x192   : > { %1196 = shalt.err (!%p1193_p11)
}
 0x193   : > { %s1197_s15 = scalar_lea.hbm %s1629_s23, 64  ;;  %s1201_s16 = scalar_lea.hbm %s1788_s19, 128 }
 0x194   : > { %p1198_p13 = scmp.ne.s32.totalorder %s1629_s23, %s1197_s15  ;;  %p1202_p5 = scmp.lt.u32.totalorder %s1629_s23, %s1788_s19 }
 0x195   : > { %p1203_p7 = scmp.lt.u32.totalorder %s1201_s16, %s1197_s15  ;;  %p1205_p0 = scmp.lt.u32.totalorder %s1197_s15, %s1629_s23 }
 0x196   : > { %p1199_p6 = pnand %p1198_p13, %p1526_p10 }
 0x197   : > { %p1204_p9 = por %p1203_p7, %p1202_p5 }
 0x198   : > { %p1200_p3 = pneg %p1199_p6 }
 0x199   : > { %p1206_p2 = por %p1205_p0, %p1204_p9 }
 0x19b   : > { %p1207_p4 = pnand %p1206_p2, %p1200_p3 }
 0x19d   : > { %1210 = shalt.err (!%p1207_p4)
}
 0x19e   : > { %943 = dma.vmem_to_hbm [thread:$0]  (%p1526_p10), %s1631_s25, 64, %s1629_s23, %s1669_s6   ;;  %v626_v24 = vadd.f32 %v883_v22, %v625_v23  ;;  %v926_v25 = vpop.f32.mrb[5].mxu0 }
 0x19f   : > { %v628_v26 = vpop.f32.mrb[6].mxu0  ;;  %s1792_s17 = sld [smem:[#allocation25_spill]]  ;;  %s1211_s29 = scalar_lea.vmem %s687_s18, 64 }
 0x1a0   : > { %v631_v27 = vpack.c.bf16 %v626_v24, %v626_v24  ;;  %v927_v28 = vpop.f32.mrb[7].mxu0  ;;  %p1212_p8 = scmp.ne.s32.totalorder %s687_s18, %s1211_s29  ;;  %s1317_s25 = smov [#allocation13]  }
 0x1a1   : > { %s1215_s23 = sshll.u32 %s1317_s25, 4  ;;  %s1216_s23 = int_to_ptr.vmem [resolvable:$false] %s1215_s23 }
 0x1a2   : > { %632 = vst.msk [vmem:[%s430_s12] sm:$0xf] %vm501_vm2, %v631_v27  ;;  %p1213_p1 = pnand %p1212_p8, %p1526_p10  ;;  %s1217_s15 = scalar_lea.vmem %s1216_s23, 128 }
 0x1a3   : > { %p1218_p11 = scmp.lt.s32.totalorder %s687_s18, %s1216_s23  ;;  %p1219_p13 = scmp.lt.s32.totalorder %s1217_s15, %s1211_s29 }
 0x1a4   : > { %p1214_p12 = pneg %p1213_p1 }
 0x1a5   : > { %s1697_s0 = scalar_lea.hbm %s1792_s17, %s1610_s21  ;;  %p1220_p6 = por %p1219_p13, %p1218_p11 }
 0x1a7   : > { %p1221_p3 = pnand %p1220_p6, %p1214_p12 }
 0x1a9   : > { %1224 = shalt.err (!%p1221_p3)
}
 0x1aa   : > { %s1225_s30 = scalar_lea.hbm %s1697_s0, 64  ;;  %s1229_s9 = scalar_lea.hbm %s1792_s17, 128 }
 0x1ab   : > { %p1226_p5 = scmp.ne.s32.totalorder %s1697_s0, %s1225_s30  ;;  %p1230_p0 = scmp.lt.u32.totalorder %s1697_s0, %s1792_s17 }
 0x1ac   : > { %p1231_p2 = scmp.lt.u32.totalorder %s1229_s9, %s1225_s30  ;;  %p1233_p8 = scmp.lt.u32.totalorder %s1225_s30, %s1697_s0 }
 0x1ad   : > { %p1227_p7 = pnand %p1226_p5, %p1526_p10 }
 0x1ae   : > { %p1232_p4 = por %p1231_p2, %p1230_p0 }
 0x1af   : > { %p1228_p9 = pneg %p1227_p7 }
 0x1b0   : > { %p1234_p1 = por %p1233_p8, %p1232_p4 }
 0x1b2   : > { %p1235_p12 = pnand %p1234_p1, %p1228_p9 }
 0x1b4   : > { %1238 = shalt.err (!%p1235_p12)
}
 0x1b5   : > { %944 = dma.vmem_to_hbm [thread:$0]  (%p1526_p10), %s687_s18, 64, %s1697_s0, %s1669_s6  }
 0x1b6 PF: > { %s1793_s1 = sld [smem:[#allocation19_spill]]  ;;  %s1794_s20 = sld [smem:[#allocation20_spill]] }
 0x1b7   : > { %p1796_p13 = scmp.ge.s32.totalorder %s1305_s14, 2 }
 0x1bc   : > { %s698_s27 = sand.u32 1, %s1793_s1   ;;  %p1795_p11 = scmp.ne.s32.totalorder %s1794_s20, 0 }
 0x1bd   : > { %s699_s24 = scalar_lea.sflag [#allocation4], %s698_s27 }
 0x1be   : > { %p963_p6 = pnand %p1796_p13, %p1795_p11 }
 0x1c0   : > { %1276 = dma.done.wait (!%p963_p6), %s699_s24, 64  }
 0x1c1   : > { %1278 = vsyncadd (!%p963_p6), %s699_s24, 4294967232  ;;  %s1797_s29 = sadd.s32 4294967294, %s1305_s14  }
 0x1c2   : > { %s707_s25 = sand.u32 1, %s1797_s29  }
 0x1c3   : > { %s708_s23 = scalar_lea.sflag [#allocation12], %s707_s25 }
 0x1c4   : > { %1280 = dma.done.wait (!%p963_p6), %s708_s23, 128  }
 0x1c5   : > { %1282 = vsyncadd (!%p963_p6), %s708_s23, 4294967168  ;;  %s31_s14 = sadd.s32 1, %s1305_s14   ;;  %s1798_s30 = smov %s1289_s10 }
 0x1c6   : > { %p28_p10 = scmp.ge.s32.totalorder %s31_s14, 4   ;;  %s1799_s10 = smov %s1293_s11 }
 0x1c7   : > { %s1800_s11 = smov %s1538_s28  ;;  %s1801_s12 = smov %s1301_s13 }
 0x1c8   : > { %s1802_s13 = smov %s1804_s22  ;;  %30 = sbr.rel (!%p28_p10) target bundleno = 16 (0x10), region = 137 }
 0x1cf   :  { %722 = vsyncpa [#allocation3], 1 }
 0x1d0   :  { %724 = vsyncpa [#allocation3 + $0x1], 1 }
 0x1d1   :  { %725 = vsyncpa [#allocation6], 1 }
 0x1d2   :  { %726 = vsyncpa [#allocation9], 1 }
 0x1d3   :  { %727 = vsyncpa [#allocation4], 1 }
 0x1d4   :  { %729 = vsyncpa [#allocation4 + $0x1], 1 }
 0x1d5   :  { %730 = vsyncpa [#allocation12], 1 }
 0x1d6   :  { %732 = vsyncpa [#allocation12 + $0x1], 1 }

</bundles_post_ra>
